<compile_context>
chip_gen: v5e
topology: v5e:2x2
jax: 0.10.0
libtpu: 0.0.40
codegen_flags: <defaults>
</compile_context>

<pallas_src>
import math
from functools import partial

import jax
import jax.numpy as jnp
from jax.experimental import pallas as pl
from jax.experimental.pallas import tpu as pltpu

_LANE = 128


def _round_up(a, b):
    return ((a + b - 1) // b) * b


def _cdiv(a, b):
    return (a + b - 1) // b


def _tpu_generation():
    try:
        kind = jax.devices()[0].device_kind.lower()
    except Exception:
        kind = ""
    if "v7" in kind:
        return "v7x"
    if "v6" in kind:
        return "v6e"
    if "v5" in kind:
        return "v5"
    return "unknown"


# Per-generation knobs: vmem_cap = what we let Mosaic use (headroom vs physical VMEM),
# tm / th = target row / hidden tiles.
_GEN_CFG = {
    "v5":      dict(vmem_cap=100 << 20, tm=256, th=1024),   # 128 MiB physical VMEM
    "v6e":     dict(vmem_cap=100 << 20, tm=512, th=2048),   # 128 MiB physical VMEM
    "v7x":     dict(vmem_cap=48 << 20,  tm=256, th=1024),   # 64 MiB physical -> headroom
    "unknown": dict(vmem_cap=48 << 20,  tm=256, th=1024),   # conservative default
}


def _mlp_kernel(x_ref, w1_ref, b1_ref, w2_ref, b2_ref, o_ref, acc_ref, *, approx_gelu):
    # x_ref:  (tm, D_in_p)  input dtype (cast to bf16 in-kernel)
    # w1_ref: (D_in_p, th)  bf16      b1_ref: (1, th)        f32
    # w2_ref: (th, D_out_p) bf16      b2_ref: (1, D_out_p)   f32
    # o_ref:  (tm, D_out_p) out dtype acc_ref: (tm, D_out_p) f32 scratch
    k = pl.program_id(1)

    @pl.when(k == 0)
    def _():
        acc_ref[...] = jnp.zeros_like(acc_ref)

    xb = x_ref[...].astype(jnp.bfloat16)
    h = jnp.dot(xb, w1_ref[...], preferred_element_type=jnp.float32) + b1_ref[...]

    if approx_gelu:
        # tanh approximation: goes to the otherwise-idle EUP slot (opt-in).
        h = jax.nn.gelu(h, approximate=True)
    else:
        # exact GELU (PyTorch nn.GELU default): 0.5 * x * (1 + erf(x / sqrt(2)))
        h = 0.5 * h * (1.0 + jax.lax.erf(h * jnp.float32(1.0 / math.sqrt(2.0))))

    # dropout(p=0.0) == identity

    acc_ref[...] += jnp.dot(h.astype(jnp.bfloat16), w2_ref[...],
                            preferred_element_type=jnp.float32)

    @pl.when(k == pl.num_programs(1) - 1)
    def _():
        o_ref[...] = (acc_ref[...] + b2_ref[...]).astype(o_ref.dtype)


def _plan_hidden(D_in_p, H, D_out_p, cfg):
    """Pick (th, H_p, k_steps). Prefer fully VMEM-resident weights (single k step)."""
    H_128 = _round_up(H, _LANE)
    n128 = H_128 // _LANE
    w_itemsize = 2  # bf16
    budget = int(0.6 * cfg["vmem_cap"])

    # Resident path: one reduction step -> w1/w2 block indices constant -> single DMA.
    if 2 * (D_in_p + D_out_p) * H_128 * w_itemsize <= budget:
        return H_128, H_128, 1

    # Streamed path: split H_128 into k_steps tiles of th (multiple of 128); padding
    # added is < th per whole-H (at most (k_steps-1)*128 dead hidden columns total).
    th_blocks = max(1, _cdiv(n128, max(2, _cdiv(H_128, cfg["th"]))))
    # 3 buffers per streamed weight operand (pl.Buffered(3)) must fit the budget.
    while th_blocks > 1 and 3 * (D_in_p + D_out_p) * th_blocks * _LANE * w_itemsize > budget:
        th_blocks -= 1
    th = th_blocks * _LANE
    k_steps = _cdiv(n128, th_blocks)
    return th, k_steps * th, k_steps


def prepare_mlp_params(params, *, approx_gelu=False, weight_dtype=jnp.bfloat16):
    """Pad + cast the weights ONCE (hoisted out of the per-call path) and build the
    tiling plan for the current TPU generation. Returns (plan, padded_weights).

    NOTE: matmul operands are bf16 with f32 accumulation -- a deliberate precision
    trade vs. the f32 PyTorch module (document for users expecting exact f32 parity).
    """
    w1, b1, w2, b2 = params
    D_in, H = w1.shape
    D_out = w2.shape[1]

    gen = _tpu_generation()
    cfg = _GEN_CFG[gen]

    D_in_p = _round_up(D_in, _LANE)
    D_out_p = _round_up(D_out, _LANE)
    th, H_p, k_steps = _plan_hidden(D_in_p, H, D_out_p, cfg)

    # Zero-padding keeps the math exact: padded x cols hit zero w1 rows, padded hidden
    # cols feed zero w2 rows, padded out cols get sliced off.
    w1p = jnp.pad(w1, ((0, D_in_p - D_in), (0, H_p - H))).astype(weight_dtype)
    w2p = jnp.pad(w2, ((0, H_p - H), (0, D_out_p - D_out))).astype(weight_dtype)
    b1p = jnp.pad(b1, (0, H_p - H)).reshape(1, H_p).astype(jnp.float32)
    b2p = jnp.pad(b2, (0, D_out_p - D_out)).reshape(1, D_out_p).astype(jnp.float32)

    plan = dict(gen=gen, cfg=cfg, D_in=D_in, H=H, D_out=D_out,
                D_in_p=D_in_p, D_out_p=D_out_p, H_p=H_p, th=th, k_steps=k_steps,
                approx_gelu=approx_gelu)
    return plan, (w1p, b1p, w2p, b2p)


def _mlp_pallas_2d(x2d, plan, w1p, b1p, w2p, b2p):
    M, D_in = x2d.shape
    assert D_in == plan["D_in"]
    cfg = plan["cfg"]
    D_in_p, D_out_p = plan["D_in_p"], plan["D_out_p"]
    H_p, th, k_steps = plan["H_p"], plan["th"], plan["k_steps"]
    out_dtype = x2d.dtype
    x_bytes = jnp.dtype(x2d.dtype).itemsize
    out_bytes = jnp.dtype(out_dtype).itemsize
    n_wbuf = 3 if k_steps > 1 else 2

    # Row tile: generation target, shrunk (multiple of 16) for small M. No M % tm
    # assert -- rows are padded and sliced off.
    tm = min(cfg["tm"], max(16, _round_up(M, 16)))

    def _vmem_estimate(tm_):
        e = 2 * tm_ * D_in_p * x_bytes                      # x (double buffered)
        e += n_wbuf * (D_in_p + D_out_p) * th * 2           # w1 + w2 (bf16)
        e += 2 * (th + D_out_p) * 4                         # b1 + b2
        e += 2 * tm_ * D_out_p * out_bytes                  # out (double buffered)
        e += tm_ * D_out_p * 4                              # f32 accumulator scratch
        e += 2 * tm_ * th * 4                               # fc1/GELU intermediate + headroom
        return e

    while _vmem_estimate(tm) > int(0.85 * cfg["vmem_cap"]) and tm > 64:
        tm //= 2
    # v7x has 2 TensorCores; make sure the "parallel" row axis gets >= 2 blocks.
    if plan["gen"] == "v7x" and _cdiv(M, tm) < 2 and tm >= 16:
        tm //= 2
    tm = max(8, _round_up(tm, 8))

    M_p = _round_up(M, tm)
    # Skip the pad pass entirely when x is already aligned; bf16 cast happens in-kernel.
    xp = x2d if (M_p == M and D_in_p == D_in) else jnp.pad(
        x2d, ((0, M_p - M), (0, D_in_p - D_in)))

    grid = (M_p // tm, k_steps)
    vmem_limit = int(min(cfg["vmem_cap"], max(int(1.25 * _vmem_estimate(tm)), 16 << 20)))

    w_kw = {"pipeline_mode": pl.Buffered(3)} if k_steps > 1 else {}
    in_specs = [
        pl.BlockSpec((tm, D_in_p), lambda i, k: (i, 0)),           # x row tile
        pl.BlockSpec((D_in_p, th), lambda i, k: (0, k), **w_kw),   # w1 hidden slice
        pl.BlockSpec((1, th), lambda i, k: (0, k)),                # b1 hidden slice
        pl.BlockSpec((th, D_out_p), lambda i, k: (k, 0), **w_kw),  # w2 hidden slice
        pl.BlockSpec((1, D_out_p), lambda i, k: (0, 0)),           # b2
    ]

    # Truthful advisory cost: weights read once when resident, else once per row tile.
    w_reads = 1 if k_steps == 1 else (M_p // tm)
    cost = pl.CostEstimate(
        flops=2 * M_p * (D_in_p * H_p + H_p * D_out_p),
        transcendentals=M_p * H_p,
        bytes_accessed=int(M_p * D_in_p * x_bytes
                           + (w1p.size + w2p.size) * 2 * w_reads
                           + (b1p.size + b2p.size) * 4
                           + M_p * D_out_p * out_bytes),
    )

    out = pl.pallas_call(
        partial(_mlp_kernel, approx_gelu=plan["approx_gelu"]),
        out_shape=jax.ShapeDtypeStruct((M_p, D_out_p), out_dtype),
        grid_spec=pltpu.PrefetchScalarGridSpec(
            num_scalar_prefetch=0,
            grid=grid,
            in_specs=in_specs,
            out_specs=pl.BlockSpec((tm, D_out_p), lambda i, k: (i, 0)),
            scratch_shapes=[pltpu.VMEM((tm, D_out_p), jnp.float32)],
        ),
        compiler_params=pltpu.CompilerParams(
            dimension_semantics=("parallel", "arbitrary"),
            vmem_limit_bytes=vmem_limit),
        cost_estimate=cost,
    )(xp, w1p, b1p, w2p, b2p)

    return out[:M, :plan["D_out"]]


def mlp_forward(x, prepared):
    """x: (..., D_in). `prepared` = prepare_mlp_params(params). Mirrors Mlp.forward (drop=0)."""
    plan, (w1p, b1p, w2p, b2p) = prepared
    orig_shape = x.shape
    x2d = x.reshape(-1, orig_shape[-1])
    y2d = _mlp_pallas_2d(x2d, plan, w1p, b1p, w2p, b2p)
    return y2d.reshape(orig_shape[:-1] + (plan["D_out"],))


def init_mlp_params(key, in_features, hidden_features=None, out_features=None,
                    dtype=jnp.float32):
    """Deterministic init matching nn.Linear default (uniform +- 1/sqrt(fan_in))."""
    out_features = out_features or in_features
    hidden_features = hidden_features or in_features
    k1, k2, k3, k4 = jax.random.split(key, 4)

    bound1 = 1.0 / math.sqrt(in_features)
    w1 = jax.random.uniform(k1, (in_features, hidden_features), dtype,
                            minval=-bound1, maxval=bound1)
    b1 = jax.random.uniform(k2, (hidden_features,), dtype,
                            minval=-bound1, maxval=bound1)

    bound2 = 1.0 / math.sqrt(hidden_features)
    w2 = jax.random.uniform(k3, (hidden_features, out_features), dtype,
                            minval=-bound2, maxval=bound2)
    b2 = jax.random.uniform(k4, (out_features,), dtype,
                            minval=-bound2, maxval=bound2)
    return (w1, b1, w2, b2)


if __name__ == "__main__":
    key = jax.random.PRNGKey(0)
    kx, kp = jax.random.split(key)

    B, N, D_in, H, D_out = 2, 8, 32, 64, 32   # small token-sequence shapes
    x = jax.random.normal(kx, (B, N, D_in), dtype=jnp.float32)
    params = init_mlp_params(kp, D_in, hidden_features=H, out_features=D_out)

    prepared = prepare_mlp_params(params)     # pad + bf16 cast weights once
    y = mlp_forward(x, prepared)
    y = jax.block_until_ready(y)

    # pure-JAX f32 reference check (kernel uses bf16 matmul operands -> looser tol)
    w1, b1, w2, b2 = params
    h_ref = x @ w1 + b1
    h_ref = 0.5 * h_ref * (1.0 + jax.lax.erf(h_ref / jnp.sqrt(2.0)))
    y_ref = h_ref @ w2 + b2
    assert y.shape == (B, N, D_out)
    assert jnp.allclose(y, y_ref, atol=5e-2, rtol=5e-2), \
        float(jnp.max(jnp.abs(y - y_ref)))

    print("KERNEL_OK")
</pallas_src>

<mosaic_0001>
module attributes {stable_mosaic.version = 11 : i64} {
  func.func @_mlp_kernel(%arg0: i32, %arg1: i32, %arg2: memref<16x128xf32, #tpu.memory_space<vmem>>, %arg3: memref<128x128xbf16, #tpu.memory_space<vmem>>, %arg4: memref<1x128xf32, #tpu.memory_space<vmem>>, %arg5: memref<128x128xbf16, #tpu.memory_space<vmem>>, %arg6: memref<1x128xf32, #tpu.memory_space<vmem>>, %arg7: memref<16x128xf32, #tpu.memory_space<vmem>>, %arg8: memref<16x128xf32, #tpu.memory_space<vmem>>) attributes {dimension_semantics = [#tpu.dimension_semantics<parallel>, #tpu.dimension_semantics<arbitrary>], iteration_bounds = array<i64: 1, 1>, scalar_prefetch = 0 : i64, scratch_operands = 1 : i64, tpu.core_type = #tpu.core_type<tc>, window_params = [{transform_indices = @transform_0, window_bounds = array<i64: 16, 128>}, {transform_indices = @transform_1, window_bounds = array<i64: 128, 128>}, {transform_indices = @transform_2, window_bounds = array<i64: 1, 128>}, {transform_indices = @transform_3, window_bounds = array<i64: 128, 128>}, {pipeline_mode = #tpu.pipeline_mode<synchronous>, transform_indices = @transform_4, window_bounds = array<i64: 1, 128>}, {transform_indices = @transform_5, window_bounds = array<i64: 16, 128>}]} {
    %c0_i32 = arith.constant 0 : i32
    %0 = arith.cmpi eq, %arg1, %c0_i32 : i32
    %1 = arith.extui %0 : i1 to i32
    %c0_i32_0 = arith.constant 0 : i32
    %2 = arith.cmpi ne, %1, %c0_i32_0 : i32
    scf.if %2 {
      %cst_18 = arith.constant 0.000000e+00 : f32
      %27 = vector.broadcast %cst_18 : f32 to vector<16x128xf32>
      %c0_19 = arith.constant 0 : index
      %c0_20 = arith.constant 0 : index
      %28 = vector.load %arg8[%c0_19, %c0_20] : memref<16x128xf32, #tpu.memory_space<vmem>>, vector<16x128xf32>
      tpu.vector_store %arg8[%c0_19, %c0_20], %27 {strides = array<i32>} : memref<16x128xf32, #tpu.memory_space<vmem>>, vector<16x128xf32>,
    } else {
    }
    %c0 = arith.constant 0 : index
    %c0_1 = arith.constant 0 : index
    %3 = vector.load %arg2[%c0, %c0_1] : memref<16x128xf32, #tpu.memory_space<vmem>>, vector<16x128xf32>
    %4 = arith.truncf %3 : vector<16x128xf32> to vector<16x128xbf16>
    %c0_2 = arith.constant 0 : index
    %c0_3 = arith.constant 0 : index
    %5 = vector.load %arg3[%c0_2, %c0_3] : memref<128x128xbf16, #tpu.memory_space<vmem>>, vector<128x128xbf16>
    %cst = arith.constant dense<0.000000e+00> : vector<16x128xf32>
    %6 = tpu.matmul %4, %5, %cst {dimension_numbers = #tpu.dot_dimension_numbers<[1], [0], [0], [1], [0, 0, 1, 1], [], []>} : vector<16x128xbf16>, vector<128x128xbf16>, vector<16x128xf32> -> vector<16x128xf32>
    %c0_4 = arith.constant 0 : index
    %c0_5 = arith.constant 0 : index
    %7 = vector.load %arg4[%c0_4, %c0_5] : memref<1x128xf32, #tpu.memory_space<vmem>>, vector<1x128xf32>
    %8 = vector.broadcast %7 : vector<1x128xf32> to vector<16x128xf32>
    %9 = arith.addf %6, %8 : vector<16x128xf32>
    %cst_6 = arith.constant 5.000000e-01 : f32
    %10 = vector.broadcast %cst_6 : f32 to vector<16x128xf32>
    %11 = arith.mulf %10, %9 : vector<16x128xf32>
    %cst_7 = arith.constant 0.707106769 : f32
    %12 = vector.broadcast %cst_7 : f32 to vector<16x128xf32>
    %13 = arith.mulf %9, %12 : vector<16x128xf32>
    %14 = math.erf %13 : vector<16x128xf32>
    %cst_8 = arith.constant 1.000000e+00 : f32
    %15 = vector.broadcast %cst_8 : f32 to vector<16x128xf32>
    %16 = arith.addf %15, %14 : vector<16x128xf32>
    %17 = arith.mulf %11, %16 : vector<16x128xf32>
    %c0_9 = arith.constant 0 : index
    %c0_10 = arith.constant 0 : index
    %18 = vector.load %arg8[%c0_9, %c0_10] : memref<16x128xf32, #tpu.memory_space<vmem>>, vector<16x128xf32>
    %19 = arith.truncf %17 : vector<16x128xf32> to vector<16x128xbf16>
    %c0_11 = arith.constant 0 : index
    %c0_12 = arith.constant 0 : index
    %20 = vector.load %arg5[%c0_11, %c0_12] : memref<128x128xbf16, #tpu.memory_space<vmem>>, vector<128x128xbf16>
    %cst_13 = arith.constant dense<0.000000e+00> : vector<16x128xf32>
    %21 = tpu.matmul %19, %20, %cst_13 {dimension_numbers = #tpu.dot_dimension_numbers<[1], [0], [0], [1], [0, 0, 1, 1], [], []>} : vector<16x128xbf16>, vector<128x128xbf16>, vector<16x128xf32> -> vector<16x128xf32>
    %22 = arith.addf %18, %21 : vector<16x128xf32>
    %c0_14 = arith.constant 0 : index
    %c0_15 = arith.constant 0 : index
    %23 = vector.load %arg8[%c0_14, %c0_15] : memref<16x128xf32, #tpu.memory_space<vmem>>, vector<16x128xf32>
    tpu.vector_store %arg8[%c0_14, %c0_15], %22 {strides = array<i32>} : memref<16x128xf32, #tpu.memory_space<vmem>>, vector<16x128xf32>,
    %c0_i32_16 = arith.constant 0 : i32
    %24 = arith.cmpi eq, %arg1, %c0_i32_16 : i32
    %25 = arith.extui %24 : i1 to i32
    %c0_i32_17 = arith.constant 0 : i32
    %26 = arith.cmpi ne, %25, %c0_i32_17 : i32
    scf.if %26 {
      %c0_18 = arith.constant 0 : index
      %c0_19 = arith.constant 0 : index
      %27 = vector.load %arg8[%c0_18, %c0_19] : memref<16x128xf32, #tpu.memory_space<vmem>>, vector<16x128xf32>
      %c0_20 = arith.constant 0 : index
      %c0_21 = arith.constant 0 : index
      %28 = vector.load %arg6[%c0_20, %c0_21] : memref<1x128xf32, #tpu.memory_space<vmem>>, vector<1x128xf32>
      %29 = vector.broadcast %28 : vector<1x128xf32> to vector<16x128xf32>
      %30 = arith.addf %27, %29 : vector<16x128xf32>
      %c0_22 = arith.constant 0 : index
      %c0_23 = arith.constant 0 : index
      %31 = vector.load %arg7[%c0_22, %c0_23] : memref<16x128xf32, #tpu.memory_space<vmem>>, vector<16x128xf32>
      tpu.vector_store %arg7[%c0_22, %c0_23], %30 {strides = array<i32>} : memref<16x128xf32, #tpu.memory_space<vmem>>, vector<16x128xf32>,
    } else {
    }
    return
  }
  func.func @transform_0(%arg0: i32, %arg1: i32) -> (i32, i32) {
    %c0_i32 = arith.constant 0 : i32
    %c0_i32_0 = arith.constant 0 : i32
    return %arg0, %c0_i32 : i32, i32
  }
  func.func @transform_1(%arg0: i32, %arg1: i32) -> (i32, i32) {
    %c0_i32 = arith.constant 0 : i32
    %c0_i32_0 = arith.constant 0 : i32
    return %c0_i32, %arg1 : i32, i32
  }
  func.func @transform_2(%arg0: i32, %arg1: i32) -> (i32, i32) {
    %c0_i32 = arith.constant 0 : i32
    %c0_i32_0 = arith.constant 0 : i32
    return %c0_i32, %arg1 : i32, i32
  }
  func.func @transform_3(%arg0: i32, %arg1: i32) -> (i32, i32) {
    %c0_i32 = arith.constant 0 : i32
    %c0_i32_0 = arith.constant 0 : i32
    return %arg1, %c0_i32 : i32, i32
  }
  func.func @transform_4(%arg0: i32, %arg1: i32) -> (i32, i32) {
    %c0_i32 = arith.constant 0 : i32
    %c0_i32_0 = arith.constant 0 : i32
    %c0_i32_1 = arith.constant 0 : i32
    return %c0_i32, %c0_i32_0 : i32, i32
  }
  func.func @transform_5(%arg0: i32, %arg1: i32) -> (i32, i32) {
    %c0_i32 = arith.constant 0 : i32
    %c0_i32_0 = arith.constant 0 : i32
    return %arg0, %c0_i32 : i32, i32
  }
}

</mosaic_0001>

<bundles_post_ra>
// kernel: tpu_custom_call.1
= control target key start
LH: loop header
LB: loop body
LE: loop exit
PB: predicated region body
PF: predicated region fallthrough
CT: control target
= control target key end

     0   :  { %10 = vsyncpa [#allocation4], 0  ;;  %s643_s0 = inlined_call_operand.hbm [shape: f32[16,128], index: 0, kind: input, shape index: {}]   ;;  %s644_s1 = inlined_call_operand.hbm [shape: bf16[128,128], index: 1, kind: input, shape index: {}]   ;;  %s645_s2 = inlined_call_operand.vmem [shape: f32[1,128], index: 2, kind: input, shape index: {}]   ;;  %s646_s3 = inlined_call_operand.hbm [shape: bf16[128,128], index: 3, kind: input, shape index: {}]   ;;  %s647_s4 = inlined_call_operand.vmem [shape: f32[1,128], index: 4, kind: input, shape index: {}]   ;;  %s648_s5 = inlined_call_operand.hbm [shape: f32[16,128], index: 5, kind: output, shape index: {}]  }
   0x1   :  { %11 = vsyncpa [#allocation7], 0  ;;  %s30_s20 = sshll.u32 %s644_s1, 4  ;;  %s31_s20 = int_to_ptr.hbm [resolvable:$true] %s30_s20 }
   0x2   :  { %12 = vsyncpa [#allocation5], 0  ;;  %s563_s21 = smov [#allocation6]   ;;  %s17_s25 = sshll.u32 %s643_s0, 4  ;;  %s18_s25 = int_to_ptr.hbm [resolvable:$true] %s17_s25 }
   0x3   :  { %s32_s22 = sshll.u32 %s563_s21, 4  ;;  %s564_s26 = smov 64   ;;  %s33_s22 = int_to_ptr.vmem [resolvable:$true] %s32_s22 }
   0x4   :  { %s565_s27 = smov 4   ;;  %s566_s28 = smov [#allocation3]  }
   0x5   :  { %38 = dma.hbm_to_vmem [thread:$0]  %s31_s20, 1024, %s33_s22, [#allocation7], %s564_s26, %s564_s26, %s565_s27  }
   0x6   :  { %s19_s29 = sshll.u32 %s566_s28, 4  ;;  %s567_s30 = smov 128   ;;  %s20_s29 = int_to_ptr.vmem [resolvable:$true] %s19_s29 }
   0x7   :  { %s568_s6 = smov 8   ;;  %s45_s8 = sshll.u32 %s646_s3, 4  ;;  %s46_s8 = int_to_ptr.hbm [resolvable:$true] %s45_s8 }
   0x8   :  { %25 = dma.hbm_to_vmem [thread:$0]  %s18_s25, 256, %s20_s29, [#allocation4], %s567_s30, %s567_s30, %s568_s6  }
   0x9   :  { %s569_s9 = smov [#allocation8]  }
   0xa   :  { %s47_s0 = sshll.u32 %s569_s9, 4  ;;  %s48_s0 = int_to_ptr.vmem [resolvable:$true] %s47_s0 }
   0xb   :  { %53 = dma.hbm_to_vmem [thread:$0]  %s46_s8, 1024, %s48_s0, [#allocation7], %s564_s26, %s564_s26, %s565_s27  }
   0xc   :  { %557 = dma.done.wait [#allocation4], 256  }
   0xd   :  { %558 = vsyncadd [#allocation4], 4294967040 }
   0xe   :  { %559 = dma.done.wait [#allocation7], 2048  }
   0xf   :  { %560 = vsyncadd [#allocation7], 4294965248  ;;  %v438_v0 = vld [vmem:[#allocation6 + $0x38] sm:$0xff]  ;;  %v437_v1 = vld [vmem:[#allocation6 + $0x30] sm:$0xff]  ;;  %s570_s12 = smov [#allocation9]   ;;  %s351_s16 = sshll.u32 %s648_s5, 4  ;;  %s352_s16 = int_to_ptr.hbm [resolvable:$true] %s351_s16 }
  0x10   :  { %145 = vmatpush.bf16.msra.mxu0 %v438_v0  ;;  %v436_v2 = vld [vmem:[#allocation6 + $0x28] sm:$0xff]  ;;  %v435_v3 = vld [vmem:[#allocation6 + $0x20] sm:$0xff]  ;;  %v434_v4 = vld [vmem:[#allocation6 + $0x18] sm:$0xff]  ;;  %s349_s13 = sshll.u32 %s570_s12, 4  ;;  %s350_s13 = int_to_ptr.vmem [resolvable:$true] %s349_s13 }
  0x11   :  { %v433_v5 = vld [vmem:[#allocation6 + $0x10] sm:$0xff]  ;;  %v432_v6 = vld [vmem:[#allocation6 + $0x8] sm:$0xff]  ;;  %v431_v7 = vld [vmem:[#allocation6] sm:$0xff] }
  0x12   :  { %v74_v8 = vld [vmem:[#allocation3] sm:$0xff]  ;;  %v75_v9 = vld [vmem:[#allocation3 + $0x8] sm:$0xff]  ;;  %v444_v18 = vld [vmem:[#allocation8 + $0x28] sm:$0xff] }
  0x13   :  { %v76_v10 = vpack.c.bf16 %v75_v9, %v74_v8  ;;  %v455_v11 = vld [vmem:[%s645_s2] ss:$0 sm:$0xff]  ;;  %v446_v12 = vld [vmem:[#allocation8 + $0x38] sm:$0xff]  ;;  %v443_v23 = vld [vmem:[#allocation8 + $0x20] sm:$0xff] }
  0x14   :  { %146 = vmatpush.bf16.msra.mxu0 %v437_v1  ;;  %314 = vmatpush.bf16.msra.mxu1 %v446_v12  ;;  %v445_v16 = vld [vmem:[#allocation8 + $0x30] sm:$0xff]  ;;  %v442_v29 = vld [vmem:[#allocation8 + $0x18] sm:$0xff]  ;;  %v440_v43 = vld [vmem:[#allocation8 + $0x8] sm:$0xff] }
  0x15   :  { %v441_v35 = vld [vmem:[#allocation8 + $0x10] sm:$0xff]  ;;  %v439_v50 = vld [vmem:[#allocation8] sm:$0xff] }
  0x18   :  { %147 = vmatpush.bf16.msra.mxu0 %v436_v2  ;;  %315 = vmatpush.bf16.msra.mxu1 %v445_v16 }
  0x1c   :  { %148 = vmatpush.bf16.msra.mxu0 %v435_v3  ;;  %316 = vmatpush.bf16.msra.mxu1 %v444_v18 }
  0x20   :  { %149 = vmatpush.bf16.msra.mxu0 %v434_v4  ;;  %317 = vmatpush.bf16.msra.mxu1 %v443_v23 }
  0x24   :  { %150 = vmatpush.bf16.msra.mxu0 %v433_v5  ;;  %318 = vmatpush.bf16.msra.mxu1 %v442_v29 }
  0x28   :  { %151 = vmatpush.bf16.msra.mxu0 %v432_v6  ;;  %319 = vmatpush.bf16.msra.mxu1 %v441_v35 }
  0x2c   :  { %152 = vmatpush.bf16.msra.mxu0 %v431_v7  ;;  %320 = vmatpush.bf16.msra.mxu1 %v440_v43 }
  0x2f   :  { %153 = vmatmul.bf16.vlgmr.msra.gmra.mxu0 %v76_v10 }
  0x30   :  { %321 = vmatpush.bf16.msra.mxu1 %v439_v50 }
  0xac   :  { %v154_v13 = vpop.f32.mrf.mxu0 }
  0xad   :  { %v616_v14 = vadd.f32 %v455_v11, %v154_v13 }
  0xaf   :  { %v619_v15 = vmul.f32 0.70710677, %v616_v14 }
  0xb1   :  { %v163_v17 = vmul.f32 %v619_v15, %v619_v15 }
  0xb3   :  { %v164_v19 = vmin.f32 %v163_v17, 16.0 }
  0xb4   :  { %v156_v20 = vpop.f32.mrf.mxu0 }
  0xb5   :  { %v165_v21 = vmul.f32 2.1237322e-06, %v164_v19  ;;  %v623_v22 = vadd.f32 %v455_v11, %v156_v20  ;;  %v176_v24 = vmul.f32 3.8918573e-05, %v164_v19 }
  0xb7   :  { %v166_v25 = vadd.f32 0.00028619796, %v165_v21  ;;  %v626_v26 = vmul.f32 0.70710677, %v623_v22  ;;  %v177_v27 = vadd.f32 0.001143296, %v176_v24 }
  0xb9   :  { %v203_v28 = vmul.f32 %v626_v26, %v626_v26  ;;  %v167_v30 = vmul.f32 %v166_v25, %v164_v19  ;;  %v178_v31 = vmul.f32 %v177_v27, %v164_v19 }
  0xbb   :  { %v204_v32 = vmin.f32 %v203_v28, 16.0  ;;  %v179_v33 = vadd.f32 0.014752088, %v178_v31  ;;  %v168_v37 = vadd.f32 0.0036580483, %v167_v30 }
  0xbd   :  { %v205_v34 = vmul.f32 2.1237322e-06, %v204_v32  ;;  %v216_v36 = vmul.f32 3.8918573e-05, %v204_v32  ;;  %v180_v38 = vmul.f32 %v179_v33, %v164_v19  ;;  %v169_v45 = vmul.f32 %v168_v37, %v164_v19 }
  0xbe   :  { %v160_v37 = vmul.f32 0.5, %v623_v22 }
  0xbf   :  { %v206_v39 = vadd.f32 0.00028619796, %v205_v34  ;;  %v217_v40 = vadd.f32 0.001143296, %v216_v36  ;;  %v181_v41 = vadd.f32 0.112945676, %v180_v38 }
  0xc0   :  { %v170_v52 = vadd.f32 0.05243302, %v169_v45  ;;  %v159_v36 = vmul.f32 0.5, %v616_v14 }
  0xc1   :  { %v207_v42 = vmul.f32 %v206_v39, %v204_v32  ;;  %v218_v44 = vmul.f32 %v217_v40, %v204_v32  ;;  %v182_v46 = vmul.f32 %v181_v41, %v164_v19 }
  0xc2   :  { %v171_v58 = vmul.f32 %v170_v52, %v164_v19 }
  0xc3   :  { %v208_v47 = vadd.f32 0.0036580483, %v207_v42  ;;  %v219_v48 = vadd.f32 0.014752088, %v218_v44  ;;  %v183_v49 = vadd.f32 0.4994258, %v182_v46 }
  0xc4   :  { %v172_v62 = vadd.f32 0.18741608, %v171_v58 }
  0xc5   :  { %v220_v51 = vmul.f32 %v219_v48, %v204_v32  ;;  %v184_v53 = vmul.f32 %v183_v49, %v164_v19  ;;  %v209_v54 = vmul.f32 %v208_v47, %v204_v32 }
  0xc6   :  { %v173_v3 = vmul.f32 %v172_v62, %v164_v19 }
  0xc7   :  { %v221_v55 = vadd.f32 0.112945676, %v220_v51  ;;  %v185_v56 = vadd.f32 1.0, %v184_v53  ;;  %v210_v59 = vadd.f32 0.05243302, %v209_v54 }
  0xc8   :  { %v174_v9 = vadd.f32 1.1283791, %v173_v3 }
  0xc9   :  { %v222_v57 = vmul.f32 %v221_v55, %v204_v32  ;;  %457 = vrcp.f32 %v185_v56  ;;  %v211_v63 = vmul.f32 %v210_v59, %v204_v32  ;;  %v197_v6 = vand.u32 2147483648, %v185_v56 }
  0xca   :  { %v195_v8 = vand.u32 2147483647, %v185_v56  ;;  %vm191_vm1 = vweird.f32 %v185_v56  ;;  %v175_v18 = vmul.f32 %v174_v9, %v619_v15 }
  0xcb   :  { %v223_v60 = vadd.f32 0.4994258, %v222_v57  ;;  %v212_v4 = vadd.f32 0.18741608, %v211_v63  ;;  %v198_v13 = vor.u32 1.1754944e-38, %v197_v6 }
  0xcc   :  { %vm196_vm3 = vcmp.eq.f32.partialorder %v195_v8, 8.507059e+37 }
  0xcd   :  { %v224_v61 = vmul.f32 %v223_v60, %v204_v32  ;;  %v213_v11 = vmul.f32 %v212_v4, %v204_v32 }
  0xcf   :  { %v225_v0 = vadd.f32 1.0, %v224_v61  ;;  %v458_v1 = vpop.eup %457  ;;  %v214_v21 = vadd.f32 1.1283791, %v213_v11 }
  0xd0   :  { %v187_v2 = vmul.f32 %v458_v1, %v185_v56  ;;  %vm192_vm0 = vweird.f32 %v458_v1 }
  0xd1   :  { %459 = vrcp.f32 %v225_v0  ;;  %vm193_vm2 = vmor %vm191_vm1, %vm192_vm0  ;;  %v237_v23 = vand.u32 2147483648, %v225_v0  ;;  %v235_v27 = vand.u32 2147483647, %v225_v0  ;;  %vm231_vm5 = vweird.f32 %v225_v0 }
  0xd2   :  { %v188_v5 = vsub.f32 1.0, %v187_v2  ;;  %v215_v30 = vmul.f32 %v214_v21, %v626_v26  ;;  %v456_v26 = vld [vmem:[%s647_s4] ss:$0 sm:$0xff] }
  0xd3   :  { %v238_v29 = vor.u32 1.1754944e-38, %v237_v23  ;;  %vm236_vm7 = vcmp.eq.f32.partialorder %v235_v27, 8.507059e+37 }
  0xd4   :  { %v189_v7 = vmul.f32 %v458_v1, %v188_v5 }
  0xd6   :  { %v190_v12 = vadd.f32 %v458_v1, %v189_v7 }
  0xd7   :  { %v460_v10 = vpop.eup %459 }
  0xd8   :  { %v227_v16 = vmul.f32 %v460_v10, %v225_v0  ;;  %v194_v17 = vsel %vm193_vm2, %v458_v1, %v190_v12  ;;  %vm232_vm4 = vweird.f32 %v460_v10 }
  0xd9   :  { %v199_v20 = vsel %vm196_vm3, %v198_v13, %v194_v17  ;;  %vm233_vm6 = vmor %vm231_vm5, %vm232_vm4 }
  0xda   :  { %v228_v19 = vsub.f32 1.0, %v227_v16  ;;  %v200_v24 = vmul.f32 %v199_v20, %v175_v18 }
  0xdc   :  { %v229_v25 = vmul.f32 %v460_v10, %v228_v19  ;;  %v397_v31 = vclamps-f32 %v200_v24, 1.0 }
  0xde   :  { %v230_v28 = vadd.f32 %v460_v10, %v229_v25  ;;  %v243_v35 = vadd.f32 1.0, %v397_v31 }
  0xe0   :  { %v234_v32 = vsel %vm233_vm6, %v460_v10, %v230_v28  ;;  %v245_v39 = vmul.f32 %v243_v35, %v159_v36 }
  0xe1   :  { %v239_v33 = vsel %vm236_vm7, %v238_v29, %v234_v32 }
  0xe2   :  { %v240_v34 = vmul.f32 %v239_v33, %v215_v30 }
  0xe4   :  { %v398_v15 = vclamps-f32 %v240_v34, 1.0 }
  0xe6   :  { %v244_v38 = vadd.f32 1.0, %v398_v15 }
  0xe8   :  { %v246_v40 = vmul.f32 %v244_v38, %v160_v37 }
  0xea   :  { %v249_v41 = vpack.c.bf16 %v246_v40, %v245_v39 }
  0xec   :  { %322 = vmatmul.bf16.vlgmr.msra.gmra.mxu1 %v249_v41 }
 0x169   :  { %v323_v42 = vpop.f32.mrf.mxu1 }
 0x16a   :  { %v341_v43 = vadd.f32 %v456_v26, %v323_v42 }
 0x16c   :  { %343 = vst [vmem:[#allocation9] sm:$0xff] %v341_v43 }
 0x171   :  { %v325_v14 = vpop.f32.mrf.mxu1 }
 0x172   :  { %v342_v22 = vadd.f32 %v456_v26, %v325_v14 }
 0x174   :  { %344 = vst [vmem:[#allocation9 + $0x8] sm:$0xff] %v342_v22 }
 0x175   :  { %357 = dma.vmem_to_hbm [thread:$0]  %s350_s13, 256, %s352_s16, [#allocation5], %s567_s30, %s567_s30, %s568_s6  }
 0x176   :  { %561 = dma.done.wait [#allocation5], 256  }
 0x177   :  { %562 = vsyncadd [#allocation5], 4294967040 }
 0x178   :  { %362 = vsyncpa [#allocation4], 1 }
 0x179   :  { %363 = vsyncpa [#allocation7], 1 }
 0x17a   :  { %364 = vsyncpa [#allocation5], 1 }

</bundles_post_ra>
